<compile_context>
chip_gen: v7x
topology: tpu7x:2x2x1
jax: 0.10.0
libtpu: 0.0.40
codegen_flags: <defaults>
</compile_context>

<pallas_src>
import jax
import jax.numpy as jnp
from jax.experimental import pallas as pl
from jax.experimental.pallas import tpu as pltpu

IN_DIM = 28 * 28   # 784
H1 = 100
H2 = 50
H3 = 50
OUT = 10
LANE = 128         # lane-padded feature width
LOGIT_OFF = 64     # logits live in lanes [64, 74) of the packed output slab
TB_MAX = 2048      # largest batch tile (≈8 MiB bf16 double-buffered footprint)


def _mlp_kernel(x_ref, w1_ref, wrest_ref, b_ref, out_ref):
    """All four layers fused; operates on one (TB, 784) bf16 batch tile."""
    x = x_ref[...]                                                    # (TB, 784) bf16

    h = jnp.dot(x, w1_ref[...], preferred_element_type=jnp.float32)  # f32 accum
    h = jnp.maximum(h + b_ref[0:1, :], 0.0)                          # relu(fc1), f32 VPU

    h = jnp.dot(h.astype(jnp.bfloat16), wrest_ref[0],
                preferred_element_type=jnp.float32)
    h = jnp.maximum(h + b_ref[1:2, :], 0.0)                          # relu(fc2)

    h = jnp.dot(h.astype(jnp.bfloat16), wrest_ref[1],
                preferred_element_type=jnp.float32)
    h = jnp.maximum(h + b_ref[2:3, :], 0.0)                          # relu(fc3) = h3

    # fc4 padded weight also carries an identity block, so this single matmul
    # produces the packed slab: lanes 0:50 = h3, lanes 64:74 = logits.
    out = jnp.dot(h.astype(jnp.bfloat16), wrest_ref[2],
                  preferred_element_type=jnp.float32)
    out = out + b_ref[3:4, :]
    out_ref[...] = out.astype(out_ref.dtype)                         # bf16 slab


def prepare_params(params):
    """One-time layout prep: transpose to [in,out], pad to 128 lanes, pack, cast to bf16."""
    (w1, b1), (w2, b2), (w3, b3), (w4, b4) = params
    f32 = jnp.float32

    w1p = jnp.zeros((IN_DIM, LANE), f32).at[:, :H1].set(w1.T.astype(f32))
    w2p = jnp.zeros((LANE, LANE), f32).at[:H1, :H2].set(w2.T.astype(f32))
    w3p = jnp.zeros((LANE, LANE), f32).at[:H2, :H3].set(w3.T.astype(f32))

    # fc4: identity block forwards h3 into lanes [0:50]; real weights produce
    # the logits in lanes [64:74]. Zero columns elsewhere.
    w4p = jnp.zeros((LANE, LANE), f32)
    w4p = w4p.at[:H3, :H3].set(jnp.eye(H3, dtype=f32))
    w4p = w4p.at[:H3, LOGIT_OFF:LOGIT_OFF + OUT].set(w4.T.astype(f32))

    wrest = jnp.stack([w2p, w3p, w4p])                  # [3, 128, 128]

    ball = jnp.zeros((4, LANE), f32)
    ball = ball.at[0, :H1].set(b1.astype(f32))
    ball = ball.at[1, :H2].set(b2.astype(f32))
    ball = ball.at[2, :H3].set(b3.astype(f32))
    ball = ball.at[3, LOGIT_OFF:LOGIT_OFF + OUT].set(b4.astype(f32))

    # bf16 MXU operands (halves HBM traffic; f32 accumulation in-kernel);
    # biases stay f32 for the VPU add/relu path.
    return w1p.astype(jnp.bfloat16), wrest.astype(jnp.bfloat16), ball


def _choose_tiling(B):
    """Pick (TB, nb): TB multiple of 256 (MXU) up to TB_MAX, nb even for v7x's 2 TCs."""
    if B <= 512:
        # one tile; bf16 min sublane tile is (16, 128) -> round to multiple of 16
        return max(16, ((B + 15) // 16) * 16), 1
    nb = 2
    while (((B + nb - 1) // nb + 255) // 256) * 256 > TB_MAX:
        nb += 2
    TB = (((B + nb - 1) // nb + 255) // 256) * 256
    nb = (B + TB - 1) // TB
    if nb % 2:          # keep both v7x TensorCores busy on the tail
        nb += 1
    return TB, nb


def net_t_forward(x, prepared):
    """x: [B,1,28,28] or [B,784]. Returns (relu_fc3_out [B,50], logits [B,10]) in f32."""
    w1p, wrest, ball = prepared
    x2d = x.reshape(-1, IN_DIM).astype(jnp.bfloat16)
    B = x2d.shape[0]

    TB, nb = _choose_tiling(B)
    Bp = nb * TB
    if Bp != B:
        x2d = jnp.pad(x2d, ((0, Bp - B), (0, 0)))

    # Advisory cost + right-sized VMEM limit (double-buffered bf16 x/out tiles,
    # margin for 2x buffering of the constant-index weight specs).
    flops = 2 * B * (IN_DIM * H1 + H1 * H2 + H2 * H3 + H3 * OUT)
    bytes_accessed = 2 * (Bp * IN_DIM + w1p.size + wrest.size + Bp * LANE) + 4 * ball.size
    vmem_bytes = (2 * TB * IN_DIM * 2        # x tiles, bf16, double-buffered
                  + 2 * TB * LANE * 2        # out tiles, bf16, double-buffered
                  + 2 * 2 * (w1p.size + wrest.size)   # bf16 weights, allow 2x buffering
                  + 2 * 4 * ball.size)                # f32 biases, allow 2x buffering
    vmem_limit = min(64 * 1024 * 1024, max(16 * 1024 * 1024, 2 * vmem_bytes))

    packed = pl.pallas_call(
        _mlp_kernel,
        out_shape=jax.ShapeDtypeStruct((Bp, LANE), jnp.bfloat16),
        grid=(nb,),
        in_specs=[
            pl.BlockSpec((TB, IN_DIM), lambda i: (i, 0)),       # batch-tiled input
            pl.BlockSpec((IN_DIM, LANE), lambda i: (0, 0)),     # resident weights
            pl.BlockSpec((3, LANE, LANE), lambda i: (0, 0, 0)),
            pl.BlockSpec((4, LANE), lambda i: (0, 0)),
        ],
        out_specs=pl.BlockSpec((TB, LANE), lambda i: (i, 0)),   # lane-dense bf16 slab
        compiler_params=pltpu.CompilerParams(
            dimension_semantics=("parallel",),                  # megacore sharding on v7x
            vmem_limit_bytes=int(vmem_limit),
        ),
        cost_estimate=pl.CostEstimate(
            flops=flops, transcendentals=0, bytes_accessed=int(bytes_accessed)),
    )(x2d, w1p, wrest, ball)

    # TODO(synk): downstream consumers could read the packed bf16 slab directly and
    # skip these slices/casts; kept here to match the PyTorch (h3, logits) f32 API.
    h3 = packed[:B, :H3].astype(jnp.float32)
    logits = packed[:B, LOGIT_OFF:LOGIT_OFF + OUT].astype(jnp.float32)
    return h3, logits


def init_params(key):
    """Deterministic synthetic parameters with PyTorch nn.Linear shapes ([out, in])."""
    def linear(k, out_dim, in_dim):
        kw, kb = jax.random.split(k)
        bound = 1.0 / jnp.sqrt(in_dim)
        w = jax.random.uniform(kw, (out_dim, in_dim), jnp.float32, -bound, bound)
        b = jax.random.uniform(kb, (out_dim,), jnp.float32, -bound, bound)
        return w, b

    k1, k2, k3, k4 = jax.random.split(key, 4)
    return (
        linear(k1, H1, IN_DIM),
        linear(k2, H2, H1),
        linear(k3, H3, H2),
        linear(k4, OUT, H3),
    )


def reference_forward(x, params):
    """Pure-JAX f32 reference mirroring the PyTorch forward."""
    (w1, b1), (w2, b2), (w3, b3), (w4, b4) = params
    h = x.reshape(-1, IN_DIM)
    h = jax.nn.relu(h @ w1.T + b1)
    h = jax.nn.relu(h @ w2.T + b2)
    h = jax.nn.relu(h @ w3.T + b3)
    return h, h @ w4.T + b4


if __name__ == "__main__":
    key = jax.random.PRNGKey(0)
    kx, kp = jax.random.split(key)

    params = init_params(kp)
    prepared = prepare_params(params)     # one-time layout prep, off the per-call path
    fwd = jax.jit(net_t_forward)

    # Small batch (launch-latency regime) + a batch that exercises tiling, padding
    # and the even-tile-count rule.
    for B in (8, 1000):
        x = jax.random.normal(jax.random.fold_in(kx, B), (B, 1, 28, 28), jnp.float32)
        h3, logits = fwd(x, prepared)
        jax.block_until_ready((h3, logits))

        h3_ref, logits_ref = reference_forward(x, params)
        assert h3.shape == (B, H3) and logits.shape == (B, OUT)
        # bf16 operand/output precision (f32 accumulation) -> looser tolerances.
        assert jnp.allclose(h3, h3_ref, atol=5e-2, rtol=5e-2)
        assert jnp.allclose(logits, logits_ref, atol=5e-2, rtol=5e-2)

    print("KERNEL_OK")
</pallas_src>

<mosaic_0001>
module attributes {stable_mosaic.version = 11 : i64} {
  func.func @_mlp_kernel(%arg0: i32, %arg1: memref<16x784xbf16, #tpu.memory_space<vmem>>, %arg2: memref<784x128xbf16, #tpu.memory_space<vmem>>, %arg3: memref<3x128x128xbf16, #tpu.memory_space<vmem>>, %arg4: memref<4x128xf32, #tpu.memory_space<vmem>>, %arg5: memref<16x128xbf16, #tpu.memory_space<vmem>>) attributes {dimension_semantics = [#tpu.dimension_semantics<parallel>], iteration_bounds = array<i64: 1>, scalar_prefetch = 0 : i64, scratch_operands = 0 : i64, tpu.core_type = #tpu.core_type<tc>, window_params = [{transform_indices = @transform_0, window_bounds = array<i64: 16, 784>}, {pipeline_mode = #tpu.pipeline_mode<synchronous>, transform_indices = @transform_1, window_bounds = array<i64: 784, 128>}, {pipeline_mode = #tpu.pipeline_mode<synchronous>, transform_indices = @transform_2, window_bounds = array<i64: 3, 128, 128>}, {pipeline_mode = #tpu.pipeline_mode<synchronous>, transform_indices = @transform_3, window_bounds = array<i64: 4, 128>}, {transform_indices = @transform_4, window_bounds = array<i64: 16, 128>}]} {
    %c0 = arith.constant 0 : index
    %c0_0 = arith.constant 0 : index
    %0 = vector.load %arg1[%c0, %c0_0] : memref<16x784xbf16, #tpu.memory_space<vmem>>, vector<16x784xbf16>
    %c0_1 = arith.constant 0 : index
    %c0_2 = arith.constant 0 : index
    %1 = vector.load %arg2[%c0_1, %c0_2] : memref<784x128xbf16, #tpu.memory_space<vmem>>, vector<784x128xbf16>
    %cst = arith.constant dense<0.000000e+00> : vector<16x128xf32>
    %2 = tpu.matmul %0, %1, %cst {dimension_numbers = #tpu.dot_dimension_numbers<[1], [0], [0], [1], [0, 0, 1, 1], [], []>} : vector<16x784xbf16>, vector<784x128xbf16>, vector<16x128xf32> -> vector<16x128xf32>
    %c0_3 = arith.constant 0 : index
    %c0_4 = arith.constant 0 : index
    %3 = vector.load %arg4[%c0_3, %c0_4] : memref<4x128xf32, #tpu.memory_space<vmem>>, vector<1x128xf32>
    %4 = vector.broadcast %3 : vector<1x128xf32> to vector<16x128xf32>
    %5 = arith.addf %2, %4 : vector<16x128xf32>
    %cst_5 = arith.constant 0.000000e+00 : f32
    %6 = vector.broadcast %cst_5 : f32 to vector<16x128xf32>
    %7 = arith.maximumf %5, %6 : vector<16x128xf32>
    %8 = arith.truncf %7 : vector<16x128xf32> to vector<16x128xbf16>
    %c0_6 = arith.constant 0 : index
    %c0_7 = arith.constant 0 : index
    %c0_8 = arith.constant 0 : index
    %9 = vector.load %arg3[%c0_6, %c0_7, %c0_8] : memref<3x128x128xbf16, #tpu.memory_space<vmem>>, vector<1x128x128xbf16>
    %10 = vector.shape_cast %9 : vector<1x128x128xbf16> to vector<128x128xbf16>
    %cst_9 = arith.constant dense<0.000000e+00> : vector<16x128xf32>
    %11 = tpu.matmul %8, %10, %cst_9 {dimension_numbers = #tpu.dot_dimension_numbers<[1], [0], [0], [1], [0, 0, 1, 1], [], []>} : vector<16x128xbf16>, vector<128x128xbf16>, vector<16x128xf32> -> vector<16x128xf32>
    %c1 = arith.constant 1 : index
    %c0_10 = arith.constant 0 : index
    %12 = vector.load %arg4[%c1, %c0_10] : memref<4x128xf32, #tpu.memory_space<vmem>>, vector<1x128xf32>
    %13 = vector.broadcast %12 : vector<1x128xf32> to vector<16x128xf32>
    %14 = arith.addf %11, %13 : vector<16x128xf32>
    %cst_11 = arith.constant 0.000000e+00 : f32
    %15 = vector.broadcast %cst_11 : f32 to vector<16x128xf32>
    %16 = arith.maximumf %14, %15 : vector<16x128xf32>
    %17 = arith.truncf %16 : vector<16x128xf32> to vector<16x128xbf16>
    %c1_12 = arith.constant 1 : index
    %c0_13 = arith.constant 0 : index
    %c0_14 = arith.constant 0 : index
    %18 = vector.load %arg3[%c1_12, %c0_13, %c0_14] : memref<3x128x128xbf16, #tpu.memory_space<vmem>>, vector<1x128x128xbf16>
    %19 = vector.shape_cast %18 : vector<1x128x128xbf16> to vector<128x128xbf16>
    %cst_15 = arith.constant dense<0.000000e+00> : vector<16x128xf32>
    %20 = tpu.matmul %17, %19, %cst_15 {dimension_numbers = #tpu.dot_dimension_numbers<[1], [0], [0], [1], [0, 0, 1, 1], [], []>} : vector<16x128xbf16>, vector<128x128xbf16>, vector<16x128xf32> -> vector<16x128xf32>
    %c2 = arith.constant 2 : index
    %c0_16 = arith.constant 0 : index
    %21 = vector.load %arg4[%c2, %c0_16] : memref<4x128xf32, #tpu.memory_space<vmem>>, vector<1x128xf32>
    %22 = vector.broadcast %21 : vector<1x128xf32> to vector<16x128xf32>
    %23 = arith.addf %20, %22 : vector<16x128xf32>
    %cst_17 = arith.constant 0.000000e+00 : f32
    %24 = vector.broadcast %cst_17 : f32 to vector<16x128xf32>
    %25 = arith.maximumf %23, %24 : vector<16x128xf32>
    %26 = arith.truncf %25 : vector<16x128xf32> to vector<16x128xbf16>
    %c2_18 = arith.constant 2 : index
    %c0_19 = arith.constant 0 : index
    %c0_20 = arith.constant 0 : index
    %27 = vector.load %arg3[%c2_18, %c0_19, %c0_20] : memref<3x128x128xbf16, #tpu.memory_space<vmem>>, vector<1x128x128xbf16>
    %28 = vector.shape_cast %27 : vector<1x128x128xbf16> to vector<128x128xbf16>
    %cst_21 = arith.constant dense<0.000000e+00> : vector<16x128xf32>
    %29 = tpu.matmul %26, %28, %cst_21 {dimension_numbers = #tpu.dot_dimension_numbers<[1], [0], [0], [1], [0, 0, 1, 1], [], []>} : vector<16x128xbf16>, vector<128x128xbf16>, vector<16x128xf32> -> vector<16x128xf32>
    %c3 = arith.constant 3 : index
    %c0_22 = arith.constant 0 : index
    %30 = vector.load %arg4[%c3, %c0_22] : memref<4x128xf32, #tpu.memory_space<vmem>>, vector<1x128xf32>
    %31 = vector.broadcast %30 : vector<1x128xf32> to vector<16x128xf32>
    %32 = arith.addf %29, %31 : vector<16x128xf32>
    %33 = arith.truncf %32 : vector<16x128xf32> to vector<16x128xbf16>
    %c0_23 = arith.constant 0 : index
    %c0_24 = arith.constant 0 : index
    %34 = vector.load %arg5[%c0_23, %c0_24] : memref<16x128xbf16, #tpu.memory_space<vmem>>, vector<16x128xbf16>
    tpu.vector_store %arg5[%c0_23, %c0_24], %33 {strides = array<i32>} : memref<16x128xbf16, #tpu.memory_space<vmem>>, vector<16x128xbf16>,
    return
  }
  func.func @transform_0(%arg0: i32) -> (i32, i32) {
    %c0_i32 = arith.constant 0 : i32
    %c0_i32_0 = arith.constant 0 : i32
    return %arg0, %c0_i32 : i32, i32
  }
  func.func @transform_1(%arg0: i32) -> (i32, i32) {
    %c0_i32 = arith.constant 0 : i32
    %c0_i32_0 = arith.constant 0 : i32
    %c0_i32_1 = arith.constant 0 : i32
    return %c0_i32, %c0_i32_0 : i32, i32
  }
  func.func @transform_2(%arg0: i32) -> (i32, i32, i32) {
    %c0_i32 = arith.constant 0 : i32
    %c0_i32_0 = arith.constant 0 : i32
    %c0_i32_1 = arith.constant 0 : i32
    %c0_i32_2 = arith.constant 0 : i32
    return %c0_i32, %c0_i32_0, %c0_i32_1 : i32, i32, i32
  }
  func.func @transform_3(%arg0: i32) -> (i32, i32) {
    %c0_i32 = arith.constant 0 : i32
    %c0_i32_0 = arith.constant 0 : i32
    %c0_i32_1 = arith.constant 0 : i32
    return %c0_i32, %c0_i32_0 : i32, i32
  }
  func.func @transform_4(%arg0: i32) -> (i32, i32) {
    %c0_i32 = arith.constant 0 : i32
    %c0_i32_0 = arith.constant 0 : i32
    return %arg0, %c0_i32 : i32, i32
  }
}

</mosaic_0001>

<bundles_post_ra>
// kernel: net_t_forward.1
= control target key start
LH: loop header
LB: loop body
LE: loop exit
PB: predicated region body
PF: predicated region fallthrough
CT: control target
= control target key end

     0   :  { %v1353_v38 = vmov 0.0   ;;  %vm1354_vm0 = vmmov 0   ;;  %vm458_vm1 = vcmask 130048   ;;  %s1668_s1 = inlined_call_operand.vmem [shape: bf16[784,128], index: 1, kind: input, shape index: {}]   ;;  %s1669_s0 = inlined_call_operand.vmem [shape: bf16[16,784], index: 0, kind: input, shape index: {}]   ;;  %s1670_s2 = inlined_call_operand.vmem [shape: bf16[3,128,128], index: 2, kind: input, shape index: {}]   ;;  %s1671_s3 = inlined_call_operand.vmem [shape: f32[4,128], index: 3, kind: input, shape index: {}]   ;;  %s1672_s4 = inlined_call_operand.vmem [shape: bf16[16,128], index: 4, kind: output, shape index: {}]  }
   0x1   :  { %v1270_v0 = vld [vmem:[%s1668_s1 + $0x40] sm:$0xff]   ;;  %v1274_v4 = vld [vmem:[%s1668_s1 + $0x48] sm:$0xff]   ;;  %v1278_v8 = vld [vmem:[%s1668_s1 + $0x50] sm:$0xff]  }
   0x2   :  { %v1271_v1 = vld [vmem:[%s1668_s1] sm:$0xff]   ;;  %1107 = vmatprep.subr.bf16.mxu0 %v1270_v0  ;;  %v1275_v5 = vld [vmem:[%s1668_s1 + $0x8] sm:$0xff]   ;;  %v1279_v9 = vld [vmem:[%s1668_s1 + $0x10] sm:$0xff]  }
   0x3   :  { %v1272_v2 = vld [vmem:[%s1668_s1 + $0xc0] sm:$0xff]   ;;  %1108 = vmatpush3.bf16.msra.mxu0 %v1271_v1  ;;  %v1276_v6 = vld [vmem:[%s1668_s1 + $0xc8] sm:$0xff]   ;;  %v1280_v10 = vld [vmem:[%s1668_s1 + $0xd0] sm:$0xff]  }
   0x4   :  { %v1273_v3 = vld [vmem:[%s1668_s1 + $0x80] sm:$0xff]   ;;  %1129 = vmatprep.subr.bf16.mxu1 %v1272_v2  ;;  %1109 = vmatprep.subr.bf16.mxu0 %v1274_v4  ;;  %v1277_v7 = vld [vmem:[%s1668_s1 + $0x88] sm:$0xff]   ;;  %v1281_v11 = vld [vmem:[%s1668_s1 + $0x90] sm:$0xff]  }
   0x5   :  { %1130 = vmatpush3.bf16.msra.mxu1 %v1273_v3  ;;  %v1282_v12 = vld [vmem:[%s1668_s1 + $0x58] sm:$0xff]   ;;  %v1286_v16 = vld [vmem:[%s1668_s1 + $0x60] sm:$0xff]   ;;  %v1290_v20 = vld [vmem:[%s1668_s1 + $0x68] sm:$0xff]  }
   0x6   :  { %1131 = vmatprep.subr.bf16.mxu1 %v1276_v6  ;;  %v1283_v13 = vld [vmem:[%s1668_s1 + $0x18] sm:$0xff]   ;;  %v1287_v17 = vld [vmem:[%s1668_s1 + $0x20] sm:$0xff]   ;;  %v1291_v21 = vld [vmem:[%s1668_s1 + $0x28] sm:$0xff]  }
   0x7   :  { %1110 = vmatpush3.bf16.msra.mxu0 %v1275_v5  ;;  %v1284_v14 = vld [vmem:[%s1668_s1 + $0xd8] sm:$0xff]   ;;  %v1288_v18 = vld [vmem:[%s1668_s1 + $0xe0] sm:$0xff]   ;;  %v1292_v22 = vld [vmem:[%s1668_s1 + $0xe8] sm:$0xff]  }
   0x8   :  { %1111 = vmatprep.subr.bf16.mxu0 %v1278_v8  ;;  %v1285_v15 = vld [vmem:[%s1668_s1 + $0x98] sm:$0xff]   ;;  %v1289_v19 = vld [vmem:[%s1668_s1 + $0xa0] sm:$0xff]   ;;  %v1293_v23 = vld [vmem:[%s1668_s1 + $0xa8] sm:$0xff]  }
   0x9   :  { %1132 = vmatpush3.bf16.msra.mxu1 %v1277_v7  ;;  %v1294_v24 = vld [vmem:[%s1668_s1 + $0x70] sm:$0xff]   ;;  %v1298_v28 = vld [vmem:[%s1668_s1 + $0x78] sm:$0xff]   ;;  %v1303_v32 = vld [vmem:[%s1669_s0 + $0x4] ss:$28 sps:$4 sm:$0xff]  }
   0xa   :  { %1133 = vmatprep.subr.bf16.mxu1 %v1280_v10  ;;  %v1295_v25 = vld [vmem:[%s1668_s1 + $0x30] sm:$0xff]   ;;  %v1299_v29 = vld [vmem:[%s1668_s1 + $0x38] sm:$0xff]   ;;  %494 = vmatprep.mubr.bf16.mxu0 %v1303_v32  ;;  %v1305_v34 = vld [vmem:[%s1668_s1 + $0x140] sm:$0xff]  }
   0xb   :  { %1112 = vmatpush3.bf16.msra.mxu0 %v1279_v9  ;;  %v1296_v26 = vld [vmem:[%s1668_s1 + $0xf0] sm:$0xff]   ;;  %v1300_v30 = vld [vmem:[%s1668_s1 + $0xf8] sm:$0xff]   ;;  %v1306_v35 = vld [vmem:[%s1669_s0 + $0x8] ss:$28 sps:$4 sm:$0xff]  }
   0xc   :  { %1113 = vmatprep.subr.bf16.mxu0 %v1282_v12  ;;  %v1297_v27 = vld [vmem:[%s1668_s1 + $0xb0] sm:$0xff]   ;;  %v1301_v31 = vld [vmem:[%s1669_s0] ss:$28 sps:$4 sm:$0xff]   ;;  %v1308_v36 = vld [vmem:[%s1669_s0 + $0xc] ss:$28 sps:$4 sm:$0xff]  }
   0xd   :  { %1134 = vmatpush3.bf16.msra.mxu1 %v1281_v11  ;;  %v1304_v33 = vld [vmem:[%s1668_s1 + $0xb8] sm:$0xff]   ;;  %v1309_v37 = vld [vmem:[%s1668_s1 + $0x100] sm:$0xff]   ;;  %535 = vmatprep.mubr.bf16.mxu1 %v1308_v36  ;;  %v1310_v39 = vld [vmem:[%s1668_s1 + $0x148] sm:$0xff]  }
   0xe   :  { %1135 = vmatprep.subr.bf16.mxu1 %v1284_v14  ;;  %v1311_v40 = vld [vmem:[%s1668_s1 + $0x108] sm:$0xff]   ;;  %v1312_v41 = vld [vmem:[%s1668_s1 + $0x150] sm:$0xff]   ;;  %v1314_v43 = vld [vmem:[%s1668_s1 + $0x158] sm:$0xff]  }
   0xf   :  { %1114 = vmatpush3.bf16.msra.mxu0 %v1283_v13  ;;  %v1313_v42 = vld [vmem:[%s1668_s1 + $0x110] sm:$0xff]   ;;  %v1315_v44 = vld [vmem:[%s1668_s1 + $0x118] sm:$0xff]   ;;  %v1316_v45 = vld [vmem:[%s1668_s1 + $0x160] sm:$0xff]  }
  0x10   :  { %1115 = vmatprep.subr.bf16.mxu0 %v1286_v16  ;;  %v1317_v46 = vld [vmem:[%s1668_s1 + $0x120] sm:$0xff]   ;;  %v1318_v47 = vld [vmem:[%s1668_s1 + $0x168] sm:$0xff]   ;;  %v1327_v49 = vld [vmem:[%s1669_s0 + $0x14] ss:$28 sps:$4 sm:$0xff]  }
  0x11   :  { %1136 = vmatpush3.bf16.msra.mxu1 %v1285_v15  ;;  %v1324_v48 = vld [vmem:[%s1668_s1 + $0x180] sm:$0xff]   ;;  %v1328_v50 = vld [vmem:[%s1669_s0 + $0x18] ss:$28 sps:$4 sm:$0xff]   ;;  %v1319_v51 = vld [vmem:[%s1668_s1 + $0x128] sm:$0xff]  }
  0x12   :  { %1137 = vmatprep.subr.bf16.mxu1 %v1288_v18  ;;  %v1320_v52 = vld [vmem:[%s1668_s1 + $0x170] sm:$0xff]   ;;  %v1322_v54 = vld [vmem:[%s1668_s1 + $0x178] sm:$0xff]   ;;  %v1329_v57 = vld [vmem:[%s1670_s2] sm:$0xff]  }
  0x13   :  { %1116 = vmatpush3.bf16.msra.mxu0 %v1287_v17  ;;  %v1321_v53 = vld [vmem:[%s1668_s1 + $0x130] sm:$0xff]   ;;  %v1323_v55 = vld [vmem:[%s1668_s1 + $0x138] sm:$0xff]   ;;  %v1330_v58 = vld [vmem:[%s1670_s2 + $0x8] sm:$0xff]  }
  0x14   :  { %1117 = vmatprep.subr.bf16.mxu0 %v1290_v20  ;;  %v1325_v56 = vld [vmem:[%s1669_s0 + $0x10] ss:$28 sps:$4 sm:$0xff]   ;;  %v1332_v60 = vld [vmem:[%s1670_s2 + $0x18] sm:$0xff]   ;;  %v1333_v61 = vld [vmem:[%s1670_s2 + $0x20] sm:$0xff]  }
  0x15   :  { %1138 = vmatpush3.bf16.msra.mxu1 %v1289_v19  ;;  %v1331_v59 = vld [vmem:[%s1670_s2 + $0x10] sm:$0xff]   ;;  %v1334_v62 = vld [vmem:[%s1670_s2 + $0x28] sm:$0xff]   ;;  %v1336_v0 = vld [vmem:[%s1670_s2 + $0x38] sm:$0xff]  }
  0x16   :  { %1139 = vmatprep.subr.bf16.mxu1 %v1292_v22  ;;  %v1335_v63 = vld [vmem:[%s1670_s2 + $0x30] sm:$0xff]   ;;  %v1337_v1 = vld [vmem:[%s1670_s2 + $0x40] sm:$0xff]   ;;  %v1338_v2 = vld [vmem:[%s1670_s2 + $0x48] sm:$0xff]  }
  0x17   :  { %1118 = vmatpush3.bf16.msra.mxu0 %v1291_v21  ;;  %v1339_v3 = vld [vmem:[%s1670_s2 + $0x50] sm:$0xff]   ;;  %v1340_v4 = vld [vmem:[%s1670_s2 + $0x58] sm:$0xff]   ;;  %v1341_v5 = vld [vmem:[%s1670_s2 + $0x60] sm:$0xff]  }
  0x18   :  { %1119 = vmatprep.subr.bf16.mxu0 %v1294_v24  ;;  %v1342_v6 = vld [vmem:[%s1670_s2 + $0x68] sm:$0xff]   ;;  %v981_v8 = vld [vmem:[%s1671_s3] ss:$0 sm:$0xff] }
  0x19   :  { %1140 = vmatpush3.bf16.msra.mxu1 %v1293_v23 }
  0x1a   :  { %1141 = vmatprep.subr.bf16.mxu1 %v1296_v26 }
  0x1b   :  { %1120 = vmatpush3.bf16.msra.mxu0 %v1295_v25 }
  0x1c   :  { %1121 = vmatprep.subr.bf16.mxu0 %v1298_v28 }
  0x1d   :  { %1142 = vmatpush3.bf16.msra.mxu1 %v1297_v27 }
  0x1e   :  { %1143 = vmatprep.subr.bf16.mxu1 %v1300_v30 }
  0x1f   :  { %1122 = vmatpush3.bf16.msra.mxu0 %v1299_v29 }
  0x20   :  { %1151 = vmatprep.subr.bf16.mxu0 %v1305_v34 }
  0x21   :  { %1144 = vmatpush3.bf16.msra.mxu1 %v1304_v33 }
  0x22   :  { %495 = vmatmul.mubr.bf16.vlgmr.msra.gmra.mrb[0].mxu0 %v1301_v31  ;;  %1202 = vmatprep.subr.bf16.mxu1 %v1353_v38 }
  0x23   :  { %1152 = vmatpush3.bf16.msra.mxu0 %v1309_v37  ;;  %576 = vmatprep.mubr.bf16.mxu0 %v1327_v49  ;;  %v1350_v49 = vld [vmem:[%s1670_s2 + $0xa8] sm:$0xff]  }
  0x24   :  { %536 = vmatmul.mubr.bf16.vlgmr.msra.gmra.mrb[0].mxu1 %v1306_v35  ;;  %1153 = vmatprep.subr.bf16.mxu0 %v1310_v39 }
  0x25   :  { %1204 = vmatprep.mubr.msk.bf16.mxu1 %vm1354_vm0, %v1353_v38  ;;  %1203 = vmatpush3.bf16.msra.mxu1 %v1324_v48  ;;  %v1349_v48 = vld [vmem:[%s1670_s2 + $0xa0] sm:$0xff]  }
  0x26   :  { %1208 = vmatprep.subr.bf16.mxu1 %v1353_v38 }
  0x27   :  { %1154 = vmatpush3.bf16.msra.mxu0 %v1311_v40 }
  0x28   :  { %1155 = vmatprep.subr.bf16.mxu0 %v1312_v41 }
  0x2b   :  { %1156 = vmatpush3.bf16.msra.mxu0 %v1313_v42  ;;  %v1343_v42 = vld [vmem:[%s1670_s2 + $0x70] sm:$0xff]  }
  0x2c   :  { %1157 = vmatprep.subr.bf16.mxu0 %v1314_v43  ;;  %1205 = vmatmul.mubr.msk.bf16.vlgmr.msra.gmra.mrb[4].mxu1 %vm458_vm1, %v1328_v50  ;;  %v1344_v43 = vld [vmem:[%s1670_s2 + $0x78] sm:$0xff]   ;;  %v1039_v50 = vld [vmem:[%s1671_s3 + $0x1] ss:$0 sm:$0xff] }
  0x2d   :  { %1224 = vmatprep.mubr.msk.bf16.mxu1 %vm1354_vm0, %v1353_v38  ;;  %1209 = vmatpush3.bf16.msra.mxu1 %v1329_v57 }
  0x2e   :  { %1210 = vmatprep.subr.bf16.mxu1 %v1353_v38 }
  0x2f   :  { %1158 = vmatpush3.bf16.msra.mxu0 %v1315_v44  ;;  %v1345_v44 = vld [vmem:[%s1670_s2 + $0x80] sm:$0xff]  }
  0x30   :  { %1159 = vmatprep.subr.bf16.mxu0 %v1316_v45  ;;  %v1346_v45 = vld [vmem:[%s1670_s2 + $0x88] sm:$0xff]  }
  0x31   :  { %1211 = vmatpush3.bf16.msra.mxu1 %v1330_v58 }
  0x32   :  { %1212 = vmatprep.subr.bf16.mxu1 %v1353_v38 }
  0x33   :  { %1160 = vmatpush3.bf16.msra.mxu0 %v1317_v46  ;;  %v1347_v46 = vld [vmem:[%s1670_s2 + $0x90] sm:$0xff]  }
  0x34   :  { %1161 = vmatprep.subr.bf16.mxu0 %v1318_v47  ;;  %v1348_v47 = vld [vmem:[%s1670_s2 + $0x98] sm:$0xff]  }
  0x35   :  { %1213 = vmatpush3.bf16.msra.mxu1 %v1331_v59 }
  0x36   :  { %1214 = vmatprep.subr.bf16.mxu1 %v1353_v38 }
  0x37   :  { %1162 = vmatpush3.bf16.msra.mxu0 %v1319_v51 }
  0x38   :  { %1163 = vmatprep.subr.bf16.mxu0 %v1320_v52 }
  0x39   :  { %1215 = vmatpush3.bf16.msra.mxu1 %v1332_v60  ;;  %v1351_v60 = vld [vmem:[%s1670_s2 + $0xb0] sm:$0xff]  }
  0x3a   :  { %1216 = vmatprep.subr.bf16.mxu1 %v1353_v38 }
  0x3b   :  { %1164 = vmatpush3.bf16.msra.mxu0 %v1321_v53 }
  0x3c   :  { %1165 = vmatprep.subr.bf16.mxu0 %v1322_v54 }
  0x3d   :  { %1217 = vmatpush3.bf16.msra.mxu1 %v1333_v61  ;;  %v1352_v61 = vld [vmem:[%s1670_s2 + $0xb8] sm:$0xff]  }
  0x3e   :  { %1218 = vmatprep.subr.bf16.mxu1 %v1353_v38 }
  0x3f   :  { %1166 = vmatpush3.bf16.msra.mxu0 %v1323_v55 }
  0x40   :  { %1228 = vmatprep.subr.bf16.mxu0 %v1353_v38 }
  0x41   :  { %1219 = vmatpush3.bf16.msra.mxu1 %v1334_v62  ;;  %v1064_v62 = vld [vmem:[%s1671_s3 + $0x2] ss:$0 sm:$0xff] }
  0x42   :  { %577 = vmatmul.mubr.bf16.vlgmr.msra.gmra.mrb[4].mxu0 %v1325_v56  ;;  %1220 = vmatprep.subr.bf16.mxu1 %v1353_v38 }
  0x43   :  { %1244 = vmatprep.mubr.msk.bf16.mxu0 %vm1354_vm0, %v1353_v38  ;;  %1229 = vmatpush3.bf16.msra.mxu0 %v1337_v1 }
  0x44   :  { %1230 = vmatprep.subr.bf16.mxu0 %v1353_v38 }
  0x45   :  { %1221 = vmatpush3.bf16.msra.mxu1 %v1335_v63 }
  0x46   :  { %1222 = vmatprep.subr.bf16.mxu1 %v1353_v38 }
  0x47   :  { %1231 = vmatpush3.bf16.msra.mxu0 %v1338_v2 }
  0x48   :  { %1232 = vmatprep.subr.bf16.mxu0 %v1353_v38 }
  0x49   :  { %1223 = vmatpush3.bf16.msra.mxu1 %v1336_v0 }
  0x4a   :  { %1248 = vmatprep.subr.bf16.mxu1 %v1353_v38 }
  0x4b   :  { %1233 = vmatpush3.bf16.msra.mxu0 %v1339_v3 }
  0x4c   :  { %1234 = vmatprep.subr.bf16.mxu0 %v1353_v38 }
  0x4f   :  { %1235 = vmatpush3.bf16.msra.mxu0 %v1340_v4 }
  0x50   :  { %1236 = vmatprep.subr.bf16.mxu0 %v1353_v38 }
  0x53   :  { %1237 = vmatpush3.bf16.msra.mxu0 %v1341_v5 }
  0x54   :  { %1238 = vmatprep.subr.bf16.mxu0 %v1353_v38 }
  0x57   :  { %1239 = vmatpush3.bf16.msra.mxu0 %v1342_v6 }
  0x58   :  { %1240 = vmatprep.subr.bf16.mxu0 %v1353_v38 }
  0x5b   :  { %1241 = vmatpush3.bf16.msra.mxu0 %v1343_v42 }
  0x5c   :  { %1242 = vmatprep.subr.bf16.mxu0 %v1353_v38 }
  0x5f   :  { %1243 = vmatpush3.bf16.msra.mxu0 %v1344_v43 }
  0xf5   :  { %v1123_v7 = vpop.f32.mrb[0].mxu0 }
  0xf6   :  { %v1124_v9 = vpop.f32.mrb[1].mxu0 }
  0xf7   :  { %v1125_v10 = vadd.f32 %v1124_v9, %v1123_v7  ;;  %v1126_v11 = vpop.f32.mrb[2].mxu0  ;;  %v1145_v12 = vpop.f32.mrb[0].mxu1 }
  0xf8   :  { %v1127_v13 = vpop.f32.mrb[3].mxu0  ;;  %v1146_v16 = vpop.f32.mrb[1].mxu1 }
  0xf9   :  { %v497_v14 = vadd.f32 %v1125_v10, %v981_v8  ;;  %v1128_v15 = vadd.f32 %v1127_v13, %v1126_v11  ;;  %v1147_v17 = vadd.f32 %v1146_v16, %v1145_v12  ;;  %v1148_v18 = vpop.f32.mrb[2].mxu1 }
  0xfa   :  { %v1149_v20 = vpop.f32.mrb[3].mxu1 }
  0xfb   :  { %v500_v19 = vadd.f32 %v1128_v15, %v981_v8  ;;  %v538_v21 = vadd.f32 %v1147_v17, %v497_v14  ;;  %v1150_v22 = vadd.f32 %v1149_v20, %v1148_v18 }
  0xfd   :  { %v541_v23 = vadd.f32 %v1150_v22, %v500_v19 }
  0xff   :  { %v619_v24 = vpop.f32.mrb[4].mxu1 }
 0x100   :  { %v1206_v25 = vpop.f32.mrb[5].mxu1 }
 0x101   :  { %v622_v26 = vpop.f32.mrb[6].mxu1 }
 0x102   :  { %v1207_v27 = vpop.f32.mrb[7].mxu1 }
 0x115   :  { %v1167_v28 = vpop.f32.mrb[4].mxu0 }
 0x116   :  { %v1168_v29 = vpop.f32.mrb[5].mxu0 }
 0x117   :  { %v1169_v30 = vadd.f32 %v1168_v29, %v1167_v28  ;;  %v1170_v31 = vpop.f32.mrb[6].mxu0 }
 0x118   :  { %v1171_v32 = vpop.f32.mrb[7].mxu0 }
 0x119   :  { %v579_v33 = vadd.f32 %v1169_v30, %v538_v21  ;;  %v1172_v34 = vadd.f32 %v1171_v32, %v1170_v31 }
 0x11b   :  { %v620_v35 = vadd.f32 %v619_v24, %v579_v33  ;;  %v582_v36 = vadd.f32 %v1172_v34, %v541_v23 }
 0x11d   :  { %v623_v37 = vadd.f32 %v622_v26, %v582_v36  ;;  %v626_v39 = vmax.f32 %v620_v35, 0.0 }
 0x11f   :  { %v627_v40 = vmax.f32 %v623_v37, 0.0 }
 0x121   :  { %v628_v41 = vpack.c.bf16 %v627_v40, %v626_v39 }
 0x123   :  { %1225 = vmatmul.mubr.bf16.vlgmr.msra.gmra.mrb[8].mxu1 %v628_v41 }
 0x124   :  { %1264 = vmatprep.mubr.msk.bf16.mxu1 %vm1354_vm0, %v1353_v38  ;;  %1249 = vmatpush3.bf16.msra.mxu1 %v1345_v44 }
 0x125   :  { %1250 = vmatprep.subr.bf16.mxu1 %v1353_v38 }
 0x128   :  { %1251 = vmatpush3.bf16.msra.mxu1 %v1346_v45 }
 0x129   :  { %1252 = vmatprep.subr.bf16.mxu1 %v1353_v38 }
 0x12c   :  { %1253 = vmatpush3.bf16.msra.mxu1 %v1347_v46 }
 0x12d   :  { %1254 = vmatprep.subr.bf16.mxu1 %v1353_v38 }
 0x130   :  { %1255 = vmatpush3.bf16.msra.mxu1 %v1348_v47 }
 0x131   :  { %1256 = vmatprep.subr.bf16.mxu1 %v1353_v38 }
 0x134   :  { %1257 = vmatpush3.bf16.msra.mxu1 %v1349_v48 }
 0x135   :  { %1258 = vmatprep.subr.bf16.mxu1 %v1353_v38 }
 0x138   :  { %1259 = vmatpush3.bf16.msra.mxu1 %v1350_v49 }
 0x139   :  { %1260 = vmatprep.subr.bf16.mxu1 %v1353_v38 }
 0x13c   :  { %1261 = vmatpush3.bf16.msra.mxu1 %v1351_v60 }
 0x13d   :  { %1262 = vmatprep.subr.bf16.mxu1 %v1353_v38  ;;  %v1089_v38 = vld [vmem:[%s1671_s3 + $0x3] ss:$0 sm:$0xff] }
 0x140   :  { %1263 = vmatpush3.bf16.msra.mxu1 %v1352_v61 }
 0x1f6   :  { %v732_v51 = vpop.f32.mrb[8].mxu1 }
 0x1f7   :  { %v733_v52 = vadd.f32 %v1039_v50, %v732_v51  ;;  %v1226_v53 = vpop.f32.mrb[9].mxu1 }
 0x1f8   :  { %v735_v54 = vpop.f32.mrb[10].mxu1 }
 0x1f9   :  { %v736_v55 = vadd.f32 %v1039_v50, %v735_v54  ;;  %v1227_v56 = vpop.f32.mrb[11].mxu1  ;;  %v739_v57 = vmax.f32 %v733_v52, 0.0 }
 0x1fb   :  { %v740_v58 = vmax.f32 %v736_v55, 0.0 }
 0x1fd   :  { %v741_v59 = vpack.c.bf16 %v740_v58, %v739_v57 }
 0x1ff   :  { %1245 = vmatmul.mubr.bf16.vlgmr.msra.gmra.mrb[8].mxu0 %v741_v59 }
 0x2d2   :  { %v846_v63 = vpop.f32.mrb[8].mxu0 }
 0x2d3   :  { %v847_v0 = vadd.f32 %v1064_v62, %v846_v63  ;;  %v1246_v1 = vpop.f32.mrb[9].mxu0 }
 0x2d4   :  { %v849_v2 = vpop.f32.mrb[10].mxu0 }
 0x2d5   :  { %v850_v3 = vadd.f32 %v1064_v62, %v849_v2  ;;  %v1247_v4 = vpop.f32.mrb[11].mxu0  ;;  %v853_v5 = vmax.f32 %v847_v0, 0.0 }
 0x2d7   :  { %v854_v6 = vmax.f32 %v850_v3, 0.0 }
 0x2d9   :  { %v855_v7 = vpack.c.bf16 %v854_v6, %v853_v5 }
 0x2db   :  { %1265 = vmatmul.mubr.bf16.vlgmr.msra.gmra.mrb[12].mxu1 %v855_v7 }
 0x3ae   :  { %v960_v8 = vpop.f32.mrb[12].mxu1 }
 0x3af   :  { %v1266_v9 = vpop.f32.mrb[13].mxu1  ;;  %v961_v11 = vadd.f32 %v1089_v38, %v960_v8 }
 0x3b0   :  { %v963_v10 = vpop.f32.mrb[14].mxu1 }
 0x3b1   :  { %v964_v12 = vadd.f32 %v1089_v38, %v963_v10  ;;  %v1267_v13 = vpop.f32.mrb[15].mxu1 }
 0x3b3   :  { %v1105_v14 = vpack.c.bf16 %v964_v12, %v961_v11 }
 0x3b5   :  { %1106 = vst [vmem:[%s1672_s4] sm:$0xff] %v1105_v14  }

</bundles_post_ra>
